<compile_context>
chip_gen: v5e
topology: v5e:2x2
jax: 0.10.0
libtpu: 0.0.40
codegen_flags: <defaults>
</compile_context>

<pallas_src>
import functools

import jax
import jax.numpy as jnp
from jax.experimental import pallas as pl
from jax.experimental.pallas import tpu as pltpu


def _round_up(x, m):
    return (x + m - 1) // m * m


# ----------------------------------------------------------------------------
# Fused generator kernel (one grid step = 8 of the 16 pixels of the 4x4 map)
# ----------------------------------------------------------------------------
def _generator_kernel(z_ref, w0_ref, b0_ref, w1_ref, b1_ref, w2_ref, b2_ref,
                      w3_ref, b3_ref, out_ref, a1_ref, *, batch, c1p, p1_blk):
    """Column orderings (all folded at trace time):
         stage0 out : (N, p1_blk*c1p)      columns (p1_local, c1)
         a1 scratch : (p1_blk*N, c1p)      rows    (p1_local, n)
         stage1 out : (p1_blk*N, 4*2D)     columns (k1, c2)
         stage2 out : (p1_blk*N, 16*D)     columns (k1, k2, c3)   (block-diag w2)
         stage3 out : (p1_blk*N, 256)      columns (k1, k2, 16) ; 12 real (k3,co)
    """
    N = batch

    # ---- Stage 0: Linear + folded BN1d + ReLU ------------------------------
    zb = z_ref[...].astype(jnp.bfloat16)
    h0 = jnp.dot(zb, w0_ref[...], preferred_element_type=jnp.float32)
    h0 = jnp.maximum(h0 + b0_ref[...], 0.0)                 # (N, p1_blk*c1p)

    # scatter spatial pixels into rows (128-lane / 8-sublane aligned copies)
    for q in range(p1_blk):
        a1_ref[q * N:(q + 1) * N, :] = h0[:, q * c1p:(q + 1) * c1p]
    a1 = a1_ref[...].astype(jnp.bfloat16)

    # ---- Stage 1: ConvT(4D->2D) + BN2d + ReLU, all 4 k1 packed in lanes ----
    y1 = jnp.dot(a1, w1_ref[...], preferred_element_type=jnp.float32)
    y1 = jnp.maximum(y1 + b1_ref[...], 0.0).astype(jnp.bfloat16)

    # ---- Stage 2: ConvT(2D->D) + BN2d + ReLU, block-diag over k1 -----------
    y2 = jnp.dot(y1, w2_ref[...], preferred_element_type=jnp.float32)
    y2 = jnp.maximum(y2 + b2_ref[...], 0.0).astype(jnp.bfloat16)

    # ---- Stage 3: ConvT(D->3) + Tanh, block-diag over (k1,k2) --------------
    y3 = jnp.tanh(jnp.dot(y2, w3_ref[...], preferred_element_type=jnp.float32)
                  + b3_ref[...])
    out_ref[...] = y3.astype(out_ref.dtype)


# ----------------------------------------------------------------------------
# Parameter folding / packing (trace-time, free)
# ----------------------------------------------------------------------------
def _fold_bn(bn, bias, eps=1e-5):
    # eval-mode BN(x + bias) = a*x + (a*bias + c);  a = g/sqrt(v+eps), c = b - a*m
    a = bn["gamma"] / jnp.sqrt(bn["var"] + eps)
    c = bn["beta"] - a * bn["mean"]
    return a, a * bias + c


def _fold_and_pad_params(params):
    D = params["lin_w"].shape[0]
    c1p = _round_up(4 * D, 128)
    bf16 = jnp.bfloat16

    # ---- stage 0: Linear + BN1d; columns (p1, c1), per-pixel padded to c1p --
    a0, o0 = _fold_bn(params["bn0"], params["lin_b"])
    w0 = params["lin_w"].reshape(D, 4 * D, 4, 4).transpose(0, 2, 3, 1)  # (D,h1,w1,c1)
    a0p = a0.reshape(4 * D, 4, 4).transpose(1, 2, 0)                     # (h1,w1,c1)
    o0p = o0.reshape(4 * D, 4, 4).transpose(1, 2, 0)
    w0 = (w0 * a0p[None]).reshape(D, 16, 4 * D)
    w0 = jnp.pad(w0, ((0, 0), (0, 0), (0, c1p - 4 * D))).reshape(D, 16 * c1p)
    b0 = jnp.pad(o0p.reshape(16, 4 * D),
                 ((0, 0), (0, c1p - 4 * D))).reshape(1, 16 * c1p)

    # ---- stage 1: ConvT(4D->2D) + BN2d; columns (k1, c2), rows padded to c1p
    a1, o1 = _fold_bn(params["bn1"], params["ct1_b"])
    w1 = params["ct1_w"].transpose(0, 2, 3, 1)            # (4D, kh1, kw1, 2D)
    w1 = (w1 * a1[None, None, None, :]).reshape(4 * D, 4 * 2 * D)
    w1 = jnp.pad(w1, ((0, c1p - 4 * D), (0, 0)))
    b1 = jnp.tile(o1, 4).reshape(1, 4 * 2 * D)

    # ---- stage 2: ConvT(2D->D) + BN2d; block-diagonal over k1 --------------
    a2, o2 = _fold_bn(params["bn2"], params["ct2_b"])
    w2 = params["ct2_w"].transpose(0, 2, 3, 1)            # (2D, kh2, kw2, D)
    w2 = (w2 * a2[None, None, None, :]).reshape(2 * D, 4 * D)   # cols (k2, c3)
    w2 = jnp.kron(jnp.eye(4, dtype=w2.dtype), w2)         # (4*2D, 4*4D), rows (k1,c2)
    b2 = jnp.tile(o2, 16).reshape(1, 16 * D)              # cols (k1, k2, c3)

    # ---- stage 3: ConvT(D->3); block-diagonal over (k1,k2); 12->16 pad ------
    w3 = params["ct3_w"].transpose(0, 2, 3, 1).reshape(D, 12)   # cols (k3, co)
    w3 = jnp.pad(w3, ((0, 0), (0, 4)))                          # (D, 16)
    w3 = jnp.kron(jnp.eye(16, dtype=w3.dtype), w3)              # (16D, 256)
    b3 = jnp.tile(jnp.pad(jnp.tile(params["ct3_b"], 4), (0, 4)), 16).reshape(1, 256)

    return dict(w0=w0.astype(bf16), b0=b0,
                w1=w1.astype(bf16), b1=b1,
                w2=w2.astype(bf16), b2=b2,
                w3=w3.astype(bf16), b3=b3)


# ----------------------------------------------------------------------------
# Generator forward (single fused pallas_call + one cheap output decode)
# ----------------------------------------------------------------------------
def generator_forward(params, z):
    D = params["lin_w"].shape[0]
    N = z.shape[0]
    c1p = _round_up(4 * D, 128)
    G = 2                       # grid steps over the 16 pixels of the 4x4 map
    p1_blk = 16 // G            # pixels handled per step

    fp = _fold_and_pad_params(params)
    kernel = functools.partial(_generator_kernel, batch=N, c1p=c1p, p1_blk=p1_blk)

    out = pl.pallas_call(
        kernel,
        out_shape=jax.ShapeDtypeStruct((16 * N, 256), jnp.bfloat16),
        grid=(G,),
        in_specs=[
            pl.BlockSpec((N, D), lambda i: (0, 0)),                  # z
            pl.BlockSpec((D, p1_blk * c1p), lambda i: (0, i)),       # w0 (per-step cols)
            pl.BlockSpec((1, p1_blk * c1p), lambda i: (0, i)),       # b0
            pl.BlockSpec(fp["w1"].shape, lambda i: (0, 0)),
            pl.BlockSpec(fp["b1"].shape, lambda i: (0, 0)),
            pl.BlockSpec(fp["w2"].shape, lambda i: (0, 0)),
            pl.BlockSpec(fp["b2"].shape, lambda i: (0, 0)),
            pl.BlockSpec(fp["w3"].shape, lambda i: (0, 0)),
            pl.BlockSpec(fp["b3"].shape, lambda i: (0, 0)),
        ],
        out_specs=pl.BlockSpec((p1_blk * N, 256), lambda i: (i, 0)),
        scratch_shapes=[pltpu.VMEM((p1_blk * N, c1p), jnp.float32)],
        compiler_params=pltpu.CompilerParams(
            dimension_semantics=("parallel",)),
    )(z, fp["w0"], fp["b0"], fp["w1"], fp["b1"],
      fp["w2"], fp["b2"], fp["w3"], fp["b3"])

    # decode: rows (h1, w1, n), cols (kh1, kw1, kh2, kw2, [kh3, kw3, co] + pad)
    y = out.reshape(4, 4, N, 2, 2, 2, 2, 16)[..., :12]
    y = y.reshape(4, 4, N, 2, 2, 2, 2, 2, 2, 3)
    img = y.transpose(2, 9, 0, 3, 5, 7, 1, 4, 6, 8).reshape(N, 3, 32, 32)
    return img.astype(jnp.float32)


# ----------------------------------------------------------------------------
# Parameters (deterministic, synthetic)
# ----------------------------------------------------------------------------
def _bn_params(key, c):
    k1, k2, k3, k4 = jax.random.split(key, 4)
    return dict(
        gamma=(1.0 + 0.1 * jax.random.normal(k1, (c,))).astype(jnp.float32),
        beta=(0.1 * jax.random.normal(k2, (c,))).astype(jnp.float32),
        mean=(0.1 * jax.random.normal(k3, (c,))).astype(jnp.float32),
        var=jax.random.uniform(k4, (c,), minval=0.5, maxval=1.5).astype(jnp.float32),
    )


def init_params(key, latent_dim):
    D = latent_dim
    ks = jax.random.split(key, 11)

    def rnorm(k, shape, scale=0.05):
        return (scale * jax.random.normal(k, shape)).astype(jnp.float32)

    return dict(
        lin_w=rnorm(ks[0], (D, 64 * D)),           # (in, out) == PyTorch W.T
        lin_b=rnorm(ks[1], (64 * D,)),
        bn0=_bn_params(ks[2], 64 * D),
        ct1_w=rnorm(ks[3], (4 * D, 2 * D, 2, 2)),  # (Cin, Cout, kH, kW)
        ct1_b=rnorm(ks[4], (2 * D,)),
        bn1=_bn_params(ks[5], 2 * D),
        ct2_w=rnorm(ks[6], (2 * D, D, 2, 2)),
        ct2_b=rnorm(ks[7], (D,)),
        bn2=_bn_params(ks[8], D),
        ct3_w=rnorm(ks[9], (D, 3, 2, 2)),
        ct3_b=rnorm(ks[10], (3,)),
    )


# ----------------------------------------------------------------------------
# Pure-JAX reference (independent code path) for a numeric sanity check
# ----------------------------------------------------------------------------
def reference_forward(params, z, eps=1e-5):
    def bn1d(x, p):
        return p["gamma"] * (x - p["mean"]) / jnp.sqrt(p["var"] + eps) + p["beta"]

    def bn2d(x, p):
        g = p["gamma"][None, :, None, None]
        b = p["beta"][None, :, None, None]
        m = p["mean"][None, :, None, None]
        v = p["var"][None, :, None, None]
        return g * (x - m) / jnp.sqrt(v + eps) + b

    def convt(x, w, b):
        N, Cin, H, W = x.shape
        Cout = w.shape[1]
        out = jnp.zeros((N, Cout, 2 * H, 2 * W), jnp.float32)
        for kh in range(2):
            for kw in range(2):
                y = jnp.einsum(
                    "nchw,co->nohw", x, w[:, :, kh, kw],
                    precision=jax.lax.Precision.HIGHEST,
                )
                out = out.at[:, :, kh::2, kw::2].set(y)
        return out + b[None, :, None, None]

    D = params["lin_w"].shape[0]
    h = jnp.dot(z, params["lin_w"], precision=jax.lax.Precision.HIGHEST)
    h = jnp.maximum(bn1d(h + params["lin_b"], params["bn0"]), 0.0)
    h = h.reshape(-1, 4 * D, 4, 4)
    h = jnp.maximum(bn2d(convt(h, params["ct1_w"], params["ct1_b"]), params["bn1"]), 0.0)
    h = jnp.maximum(bn2d(convt(h, params["ct2_w"], params["ct2_b"]), params["bn2"]), 0.0)
    h = jnp.tanh(convt(h, params["ct3_w"], params["ct3_b"]))
    return h.reshape(-1, 3, 32, 32)


if __name__ == "__main__":
    latent_dim = 16
    batch = 8

    key = jax.random.PRNGKey(0)
    kp, kz = jax.random.split(key)
    params = init_params(kp, latent_dim)
    z = jax.random.normal(kz, (batch, latent_dim), dtype=jnp.float32)

    fwd = jax.jit(generator_forward)
    out = jax.block_until_ready(fwd(params, z))
    assert out.shape == (batch, 3, 32, 32), out.shape

    ref = jax.block_until_ready(reference_forward(params, z))
    max_err = float(jnp.max(jnp.abs(out - ref)))
    # kernel uses bf16 weights / activations / output (MXU bf16 pass) -> loose tol
    assert max_err < 5e-2, f"mismatch vs reference: {max_err}"

    print("KERNEL_OK")
</pallas_src>

<mosaic_0001>
module attributes {stable_mosaic.version = 11 : i64} {
  func.func @_generator_kernel(%arg0: i32, %arg1: memref<8x16xf32, #tpu.memory_space<vmem>>, %arg2: memref<16x1024xbf16, #tpu.memory_space<vmem>>, %arg3: memref<1x1024xf32, #tpu.memory_space<vmem>>, %arg4: memref<128x128xbf16, #tpu.memory_space<vmem>>, %arg5: memref<1x128xf32, #tpu.memory_space<vmem>>, %arg6: memref<128x256xbf16, #tpu.memory_space<vmem>>, %arg7: memref<1x256xf32, #tpu.memory_space<vmem>>, %arg8: memref<256x256xbf16, #tpu.memory_space<vmem>>, %arg9: memref<1x256xf32, #tpu.memory_space<vmem>>, %arg10: memref<64x256xbf16, #tpu.memory_space<vmem>>, %arg11: memref<64x128xf32, #tpu.memory_space<vmem>>) attributes {dimension_semantics = [#tpu.dimension_semantics<parallel>], iteration_bounds = array<i64: 2>, scalar_prefetch = 0 : i64, scratch_operands = 1 : i64, tpu.core_type = #tpu.core_type<tc>, window_params = [{pipeline_mode = #tpu.pipeline_mode<synchronous>, transform_indices = @transform_0, window_bounds = array<i64: 8, 16>}, {transform_indices = @transform_1, window_bounds = array<i64: 16, 1024>}, {transform_indices = @transform_2, window_bounds = array<i64: 1, 1024>}, {pipeline_mode = #tpu.pipeline_mode<synchronous>, transform_indices = @transform_3, window_bounds = array<i64: 128, 128>}, {pipeline_mode = #tpu.pipeline_mode<synchronous>, transform_indices = @transform_4, window_bounds = array<i64: 1, 128>}, {pipeline_mode = #tpu.pipeline_mode<synchronous>, transform_indices = @transform_5, window_bounds = array<i64: 128, 256>}, {pipeline_mode = #tpu.pipeline_mode<synchronous>, transform_indices = @transform_6, window_bounds = array<i64: 1, 256>}, {pipeline_mode = #tpu.pipeline_mode<synchronous>, transform_indices = @transform_7, window_bounds = array<i64: 256, 256>}, {pipeline_mode = #tpu.pipeline_mode<synchronous>, transform_indices = @transform_8, window_bounds = array<i64: 1, 256>}, {transform_indices = @transform_9, window_bounds = array<i64: 64, 256>}]} {
    %c0 = arith.constant 0 : index
    %c0_0 = arith.constant 0 : index
    %0 = vector.load %arg1[%c0, %c0_0] : memref<8x16xf32, #tpu.memory_space<vmem>>, vector<8x16xf32>
    %1 = arith.truncf %0 : vector<8x16xf32> to vector<8x16xbf16>
    %c0_1 = arith.constant 0 : index
    %c0_2 = arith.constant 0 : index
    %2 = vector.load %arg2[%c0_1, %c0_2] : memref<16x1024xbf16, #tpu.memory_space<vmem>>, vector<16x1024xbf16>
    %cst = arith.constant dense<0.000000e+00> : vector<8x1024xf32>
    %3 = tpu.matmul %1, %2, %cst {dimension_numbers = #tpu.dot_dimension_numbers<[1], [0], [0], [1], [0, 0, 1, 1], [], []>} : vector<8x16xbf16>, vector<16x1024xbf16>, vector<8x1024xf32> -> vector<8x1024xf32>
    %c0_3 = arith.constant 0 : index
    %c0_4 = arith.constant 0 : index
    %4 = vector.load %arg3[%c0_3, %c0_4] : memref<1x1024xf32, #tpu.memory_space<vmem>>, vector<1x1024xf32>
    %5 = vector.broadcast %4 : vector<1x1024xf32> to vector<8x1024xf32>
    %6 = arith.addf %3, %5 : vector<8x1024xf32>
    %cst_5 = arith.constant 0.000000e+00 : f32
    %7 = vector.broadcast %cst_5 : f32 to vector<8x1024xf32>
    %8 = arith.maximumf %6, %7 : vector<8x1024xf32>
    %9 = vector.extract_strided_slice %8 {offsets = [0, 0], sizes = [8, 128], strides = [1, 1]} : vector<8x1024xf32> to vector<8x128xf32>
    %c0_6 = arith.constant 0 : index
    %c0_7 = arith.constant 0 : index
    %10 = vector.load %arg11[%c0_6, %c0_7] : memref<64x128xf32, #tpu.memory_space<vmem>>, vector<8x128xf32>
    tpu.vector_store %arg11[%c0_6, %c0_7], %9 {strides = array<i32>} : memref<64x128xf32, #tpu.memory_space<vmem>>, vector<8x128xf32>,
    %11 = vector.extract_strided_slice %8 {offsets = [0, 128], sizes = [8, 128], strides = [1, 1]} : vector<8x1024xf32> to vector<8x128xf32>
    %c8 = arith.constant 8 : index
    %c0_8 = arith.constant 0 : index
    %12 = vector.load %arg11[%c8, %c0_8] : memref<64x128xf32, #tpu.memory_space<vmem>>, vector<8x128xf32>
    tpu.vector_store %arg11[%c8, %c0_8], %11 {strides = array<i32>} : memref<64x128xf32, #tpu.memory_space<vmem>>, vector<8x128xf32>,
    %13 = vector.extract_strided_slice %8 {offsets = [0, 256], sizes = [8, 128], strides = [1, 1]} : vector<8x1024xf32> to vector<8x128xf32>
    %c16 = arith.constant 16 : index
    %c0_9 = arith.constant 0 : index
    %14 = vector.load %arg11[%c16, %c0_9] : memref<64x128xf32, #tpu.memory_space<vmem>>, vector<8x128xf32>
    tpu.vector_store %arg11[%c16, %c0_9], %13 {strides = array<i32>} : memref<64x128xf32, #tpu.memory_space<vmem>>, vector<8x128xf32>,
    %15 = vector.extract_strided_slice %8 {offsets = [0, 384], sizes = [8, 128], strides = [1, 1]} : vector<8x1024xf32> to vector<8x128xf32>
    %c24 = arith.constant 24 : index
    %c0_10 = arith.constant 0 : index
    %16 = vector.load %arg11[%c24, %c0_10] : memref<64x128xf32, #tpu.memory_space<vmem>>, vector<8x128xf32>
    tpu.vector_store %arg11[%c24, %c0_10], %15 {strides = array<i32>} : memref<64x128xf32, #tpu.memory_space<vmem>>, vector<8x128xf32>,
    %17 = vector.extract_strided_slice %8 {offsets = [0, 512], sizes = [8, 128], strides = [1, 1]} : vector<8x1024xf32> to vector<8x128xf32>
    %c32 = arith.constant 32 : index
    %c0_11 = arith.constant 0 : index
    %18 = vector.load %arg11[%c32, %c0_11] : memref<64x128xf32, #tpu.memory_space<vmem>>, vector<8x128xf32>
    tpu.vector_store %arg11[%c32, %c0_11], %17 {strides = array<i32>} : memref<64x128xf32, #tpu.memory_space<vmem>>, vector<8x128xf32>,
    %19 = vector.extract_strided_slice %8 {offsets = [0, 640], sizes = [8, 128], strides = [1, 1]} : vector<8x1024xf32> to vector<8x128xf32>
    %c40 = arith.constant 40 : index
    %c0_12 = arith.constant 0 : index
    %20 = vector.load %arg11[%c40, %c0_12] : memref<64x128xf32, #tpu.memory_space<vmem>>, vector<8x128xf32>
    tpu.vector_store %arg11[%c40, %c0_12], %19 {strides = array<i32>} : memref<64x128xf32, #tpu.memory_space<vmem>>, vector<8x128xf32>,
    %21 = vector.extract_strided_slice %8 {offsets = [0, 768], sizes = [8, 128], strides = [1, 1]} : vector<8x1024xf32> to vector<8x128xf32>
    %c48 = arith.constant 48 : index
    %c0_13 = arith.constant 0 : index
    %22 = vector.load %arg11[%c48, %c0_13] : memref<64x128xf32, #tpu.memory_space<vmem>>, vector<8x128xf32>
    tpu.vector_store %arg11[%c48, %c0_13], %21 {strides = array<i32>} : memref<64x128xf32, #tpu.memory_space<vmem>>, vector<8x128xf32>,
    %23 = vector.extract_strided_slice %8 {offsets = [0, 896], sizes = [8, 128], strides = [1, 1]} : vector<8x1024xf32> to vector<8x128xf32>
    %c56 = arith.constant 56 : index
    %c0_14 = arith.constant 0 : index
    %24 = vector.load %arg11[%c56, %c0_14] : memref<64x128xf32, #tpu.memory_space<vmem>>, vector<8x128xf32>
    tpu.vector_store %arg11[%c56, %c0_14], %23 {strides = array<i32>} : memref<64x128xf32, #tpu.memory_space<vmem>>, vector<8x128xf32>,
    %c0_15 = arith.constant 0 : index
    %c0_16 = arith.constant 0 : index
    %25 = vector.load %arg11[%c0_15, %c0_16] : memref<64x128xf32, #tpu.memory_space<vmem>>, vector<64x128xf32>
    %26 = arith.truncf %25 : vector<64x128xf32> to vector<64x128xbf16>
    %c0_17 = arith.constant 0 : index
    %c0_18 = arith.constant 0 : index
    %27 = vector.load %arg4[%c0_17, %c0_18] : memref<128x128xbf16, #tpu.memory_space<vmem>>, vector<128x128xbf16>
    %cst_19 = arith.constant dense<0.000000e+00> : vector<64x128xf32>
    %28 = tpu.matmul %26, %27, %cst_19 {dimension_numbers = #tpu.dot_dimension_numbers<[1], [0], [0], [1], [0, 0, 1, 1], [], []>} : vector<64x128xbf16>, vector<128x128xbf16>, vector<64x128xf32> -> vector<64x128xf32>
    %c0_20 = arith.constant 0 : index
    %c0_21 = arith.constant 0 : index
    %29 = vector.load %arg5[%c0_20, %c0_21] : memref<1x128xf32, #tpu.memory_space<vmem>>, vector<1x128xf32>
    %30 = vector.broadcast %29 : vector<1x128xf32> to vector<64x128xf32>
    %31 = arith.addf %28, %30 : vector<64x128xf32>
    %cst_22 = arith.constant 0.000000e+00 : f32
    %32 = vector.broadcast %cst_22 : f32 to vector<64x128xf32>
    %33 = arith.maximumf %31, %32 : vector<64x128xf32>
    %34 = arith.truncf %33 : vector<64x128xf32> to vector<64x128xbf16>
    %c0_23 = arith.constant 0 : index
    %c0_24 = arith.constant 0 : index
    %35 = vector.load %arg6[%c0_23, %c0_24] : memref<128x256xbf16, #tpu.memory_space<vmem>>, vector<128x256xbf16>
    %cst_25 = arith.constant dense<0.000000e+00> : vector<64x256xf32>
    %36 = tpu.matmul %34, %35, %cst_25 {dimension_numbers = #tpu.dot_dimension_numbers<[1], [0], [0], [1], [0, 0, 1, 1], [], []>} : vector<64x128xbf16>, vector<128x256xbf16>, vector<64x256xf32> -> vector<64x256xf32>
    %c0_26 = arith.constant 0 : index
    %c0_27 = arith.constant 0 : index
    %37 = vector.load %arg7[%c0_26, %c0_27] : memref<1x256xf32, #tpu.memory_space<vmem>>, vector<1x256xf32>
    %38 = vector.broadcast %37 : vector<1x256xf32> to vector<64x256xf32>
    %39 = arith.addf %36, %38 : vector<64x256xf32>
    %cst_28 = arith.constant 0.000000e+00 : f32
    %40 = vector.broadcast %cst_28 : f32 to vector<64x256xf32>
    %41 = arith.maximumf %39, %40 : vector<64x256xf32>
    %42 = arith.truncf %41 : vector<64x256xf32> to vector<64x256xbf16>
    %c0_29 = arith.constant 0 : index
    %c0_30 = arith.constant 0 : index
    %43 = vector.load %arg8[%c0_29, %c0_30] : memref<256x256xbf16, #tpu.memory_space<vmem>>, vector<256x256xbf16>
    %cst_31 = arith.constant dense<0.000000e+00> : vector<64x256xf32>
    %44 = tpu.matmul %42, %43, %cst_31 {dimension_numbers = #tpu.dot_dimension_numbers<[1], [0], [0], [1], [0, 0, 1, 1], [], []>} : vector<64x256xbf16>, vector<256x256xbf16>, vector<64x256xf32> -> vector<64x256xf32>
    %c0_32 = arith.constant 0 : index
    %c0_33 = arith.constant 0 : index
    %45 = vector.load %arg9[%c0_32, %c0_33] : memref<1x256xf32, #tpu.memory_space<vmem>>, vector<1x256xf32>
    %46 = vector.broadcast %45 : vector<1x256xf32> to vector<64x256xf32>
    %47 = arith.addf %44, %46 : vector<64x256xf32>
    %48 = math.tanh %47 : vector<64x256xf32>
    %49 = arith.truncf %48 : vector<64x256xf32> to vector<64x256xbf16>
    %c0_34 = arith.constant 0 : index
    %c0_35 = arith.constant 0 : index
    %50 = vector.load %arg10[%c0_34, %c0_35] : memref<64x256xbf16, #tpu.memory_space<vmem>>, vector<64x256xbf16>
    tpu.vector_store %arg10[%c0_34, %c0_35], %49 {strides = array<i32>} : memref<64x256xbf16, #tpu.memory_space<vmem>>, vector<64x256xbf16>,
    return
  }
  func.func @transform_0(%arg0: i32) -> (i32, i32) {
    %c0_i32 = arith.constant 0 : i32
    %c0_i32_0 = arith.constant 0 : i32
    %c0_i32_1 = arith.constant 0 : i32
    return %c0_i32, %c0_i32_0 : i32, i32
  }
  func.func @transform_1(%arg0: i32) -> (i32, i32) {
    %c0_i32 = arith.constant 0 : i32
    %c0_i32_0 = arith.constant 0 : i32
    return %c0_i32, %arg0 : i32, i32
  }
  func.func @transform_2(%arg0: i32) -> (i32, i32) {
    %c0_i32 = arith.constant 0 : i32
    %c0_i32_0 = arith.constant 0 : i32
    return %c0_i32, %arg0 : i32, i32
  }
  func.func @transform_3(%arg0: i32) -> (i32, i32) {
    %c0_i32 = arith.constant 0 : i32
    %c0_i32_0 = arith.constant 0 : i32
    %c0_i32_1 = arith.constant 0 : i32
    return %c0_i32, %c0_i32_0 : i32, i32
  }
  func.func @transform_4(%arg0: i32) -> (i32, i32) {
    %c0_i32 = arith.constant 0 : i32
    %c0_i32_0 = arith.constant 0 : i32
    %c0_i32_1 = arith.constant 0 : i32
    return %c0_i32, %c0_i32_0 : i32, i32
  }
  func.func @transform_5(%arg0: i32) -> (i32, i32) {
    %c0_i32 = arith.constant 0 : i32
    %c0_i32_0 = arith.constant 0 : i32
    %c0_i32_1 = arith.constant 0 : i32
    return %c0_i32, %c0_i32_0 : i32, i32
  }
  func.func @transform_6(%arg0: i32) -> (i32, i32) {
    %c0_i32 = arith.constant 0 : i32
    %c0_i32_0 = arith.constant 0 : i32
    %c0_i32_1 = arith.constant 0 : i32
    return %c0_i32, %c0_i32_0 : i32, i32
  }
  func.func @transform_7(%arg0: i32) -> (i32, i32) {
    %c0_i32 = arith.constant 0 : i32
    %c0_i32_0 = arith.constant 0 : i32
    %c0_i32_1 = arith.constant 0 : i32
    return %c0_i32, %c0_i32_0 : i32, i32
  }
  func.func @transform_8(%arg0: i32) -> (i32, i32) {
    %c0_i32 = arith.constant 0 : i32
    %c0_i32_0 = arith.constant 0 : i32
    %c0_i32_1 = arith.constant 0 : i32
    return %c0_i32, %c0_i32_0 : i32, i32
  }
  func.func @transform_9(%arg0: i32) -> (i32, i32) {
    %c0_i32 = arith.constant 0 : i32
    %c0_i32_0 = arith.constant 0 : i32
    return %arg0, %c0_i32 : i32, i32
  }
}

</mosaic_0001>

<bundles_post_ra>
// kernel: tile.24
= control target key start
LH: loop header
LB: loop body
LE: loop exit
PB: predicated region body
PF: predicated region fallthrough
CT: control target
= control target key end

     0   :  { %s37_s8 = smov 32   ;;  %s38_s9 = smov 64   ;;  %vm7_vm0 = vcmask 261120   ;;  %vm13_vm1 = vcmask 1048320   ;;  %vm19_vm2 = vcmask 785920   ;;  %vm25_vm3 = vcmask 523520   ;;  %s55_s0 = inlined_call_operand.vmem [shape: f32[4,32], index: 0, kind: input, shape index: {}]   ;;  %s56_s1 = inlined_call_operand.vmem [shape: f32[1,128], index: 1, kind: output, shape index: {}]  }
   0x1   :  { %v4_v0 = vld [vmem:[%s55_s0] sm:$0xf]  ;;  %s36_s0 = smov 96  }
   0x2   :  { %5 = vst [vmem:[#allocation1] sm:$0xf] %v4_v0 }
   0x9   :  { %v10_v1 = vld [vmem:[#allocation1 + $0x3] sm:$0x1]   ;;  %v22_v2 = vld [vmem:[#allocation1 + $0x1] sm:$0x1]   ;;  %v16_v3 = vld [vmem:[#allocation1 + $0x2] sm:$0x1]  }
   0xa   :  { %11 = vrot.lane.b32.xlu0 %v10_v1, %s36_s0  ;;  %23 = vrot.lane.b32.xlu1 %v22_v2, %s37_s8  ;;  %v6_v4 = vld [vmem:[#allocation1] sm:$0x1]  }
   0xb   :  { %8 = vst.msk [vmem:[#allocation0] sm:$0x1] %vm7_vm0, %v6_v4  }
  0x12   :  { %17 = vrot.lane.b32.xlu0 %v16_v3, %s38_s9 }
  0x7c   :  { %v12_v5 = vpop.permute.xlu0 %11   ;;  %v24_v6 = vpop.permute.xlu1 %23  }
  0x7d   :  { %14 = vst.msk [vmem:[#allocation0] sm:$0x1] %vm13_vm1, %v12_v5  }
  0x84   :  { %v18_v7 = vpop.permute.xlu0 %17  }
  0x85   :  { %20 = vst.msk [vmem:[#allocation0] sm:$0x1] %vm19_vm2, %v18_v7  }
  0x86   :  { %26 = vst.msk [vmem:[#allocation0] sm:$0x1] %vm25_vm3, %v24_v6  }
  0x8d   :  { %v29_v8 = vld [vmem:[#allocation0] sm:$0x1] }
  0x8e   :  { %32 = vst [vmem:[%s56_s1] sm:$0x1] %v29_v8 }

// kernel: tile.23
= control target key start
LH: loop header
LB: loop body
LE: loop exit
PB: predicated region body
PF: predicated region fallthrough
CT: control target
= control target key end

     0   :  { %s22_s0 = inlined_call_operand.vmem [shape: f32[32], index: 0, kind: input, shape index: {}]   ;;  %s23_s1 = inlined_call_operand.vmem [shape: f32[4,32], index: 1, kind: output, shape index: {}]  }
   0x1   :  { %v4_v0 = vld [vmem:[%s22_s0] ss:$0 sm:$0xff] }
   0x2   :  { %5 = vst [vmem:[%s23_s1] sm:$0xf] %v4_v0 }

// kernel: tile.33
= control target key start
LH: loop header
LB: loop body
LE: loop exit
PB: predicated region body
PF: predicated region fallthrough
CT: control target
= control target key end

     0   :  { %2 = vsyncpa [#allocation1], 0  ;;  %s48_s8 = smov [#allocation0]   ;;  %s65_s0 = inlined_call_operand.hbm [shape: f32[3], index: 0, kind: input, shape index: {}]   ;;  %s66_s1 = inlined_call_operand.vmem [shape: f32[4,3], index: 1, kind: output, shape index: {}]  }
   0x1   :  { %s8_s0 = sshll.u32 %s65_s0, 4  ;;  %s10_s9 = sshll.u32 %s48_s8, 4  ;;  %s9_s0 = int_to_ptr.hbm [resolvable:$true] %s8_s0  ;;  %s11_s9 = int_to_ptr.vmem [resolvable:$true] %s10_s9 }
   0x2   :  { %13 = dma.hbm_to_vmem [thread:$0]  %s9_s0, 16, %s11_s9, [#allocation1]  }
   0x3   :  { %46 = dma.done.wait [#allocation1], 16  }
   0x4   :  { %47 = vsyncadd [#allocation1], 4294967280  ;;  %v18_v0 = vld [vmem:[#allocation0] ss:$0 sm:$0xff] }
   0x5   :  { %19 = vst [vmem:[%s66_s1] sm:$0xf] %v18_v0 }
   0x6   :  { %20 = vsyncpa [#allocation1], 1 }

// kernel: tile.34
= control target key start
LH: loop header
LB: loop body
LE: loop exit
PB: predicated region body
PF: predicated region fallthrough
CT: control target
= control target key end

     0   :  { %s37_s8 = smov 3   ;;  %s38_s9 = smov 6   ;;  %vm7_vm0 = vcmask 23552   ;;  %vm13_vm1 = vcmask 97352   ;;  %vm19_vm2 = vcmask 72752   ;;  %vm25_vm3 = vcmask 48152   ;;  %s55_s0 = inlined_call_operand.vmem [shape: f32[4,3], index: 0, kind: input, shape index: {}]   ;;  %s56_s1 = inlined_call_operand.vmem [shape: f32[12], index: 1, kind: output, shape index: {}]  }
   0x1   :  { %v4_v0 = vld [vmem:[%s55_s0] sm:$0xf]  ;;  %s36_s0 = smov 9  }
   0x2   :  { %5 = vst [vmem:[#allocation1] sm:$0xf] %v4_v0 }
   0x9   :  { %v10_v1 = vld [vmem:[#allocation1 + $0x3] sm:$0x1]   ;;  %v22_v2 = vld [vmem:[#allocation1 + $0x1] sm:$0x1]   ;;  %v16_v3 = vld [vmem:[#allocation1 + $0x2] sm:$0x1]  }
   0xa   :  { %11 = vrot.lane.b32.xlu0 %v10_v1, %s36_s0  ;;  %23 = vrot.lane.b32.xlu1 %v22_v2, %s37_s8  ;;  %v6_v4 = vld [vmem:[#allocation1] sm:$0x1]  }
   0xb   :  { %8 = vst.msk [vmem:[#allocation0] sm:$0x1] %vm7_vm0, %v6_v4  }
  0x12   :  { %17 = vrot.lane.b32.xlu0 %v16_v3, %s38_s9 }
  0x7c   :  { %v12_v5 = vpop.permute.xlu0 %11   ;;  %v24_v6 = vpop.permute.xlu1 %23  }
  0x7d   :  { %14 = vst.msk [vmem:[#allocation0] sm:$0x1] %vm13_vm1, %v12_v5  }
  0x84   :  { %v18_v7 = vpop.permute.xlu0 %17  }
  0x85   :  { %20 = vst.msk [vmem:[#allocation0] sm:$0x1] %vm19_vm2, %v18_v7  }
  0x86   :  { %26 = vst.msk [vmem:[#allocation0] sm:$0x1] %vm25_vm3, %v24_v6  }
  0x8d   :  { %v29_v8 = vld [vmem:[#allocation0] sm:$0x1] }
  0x8e   :  { %32 = vst [vmem:[%s56_s1] sm:$0x1] %v29_v8 }

// kernel: tile.38
= control target key start
LH: loop header
LB: loop body
LE: loop exit
PB: predicated region body
PF: predicated region fallthrough
CT: control target
= control target key end

     0   :  { %s28_s0 = inlined_call_operand.vmem [shape: f32[16], index: 0, kind: input, shape index: {}]   ;;  %s29_s1 = inlined_call_operand.vmem [shape: f32[16,16], index: 1, kind: output, shape index: {}]  }
   0x1   :  { %v4_v0 = vld [vmem:[%s28_s0] ss:$0 sm:$0xff] }
   0x2   :  { %5 = vst [vmem:[%s29_s1] sm:$0xff] %v4_v0 }
   0x3   :  { %8 = vst [vmem:[%s29_s1 + $0x8] sm:$0xff] %v4_v0 }

// kernel: tile.39
= control target key start
LH: loop header
LB: loop body
LE: loop exit
PB: predicated region body
PF: predicated region fallthrough
CT: control target
= control target key end

     0   :  { %s7_s6 = smov 3  ;;  %s21_s9 = smov 3  ;;  %vm4_vm0 = vcmask 130048   ;;  %vm11_vm1 = vcmask 1048448   ;;  %vm18_vm2 = vcmask 917248   ;;  %vm25_vm3 = vcmask 786048   ;;  %s129_s0 = inlined_call_operand.vmem [shape: f32[16,16], index: 0, kind: input, shape index: {}]   ;;  %s130_s1 = inlined_call_operand.vmem [shape: f32[1,256], index: 1, kind: output, shape index: {}]  }
   0x1   :  { %v67_v0 = vld [vmem:[%s129_s0 + $0x7] ss:$8 sm:%s7_s6]   ;;  %s82_s10 = smov 112   ;;  %v69_v1 = vld [vmem:[%s129_s0 + $0x5] ss:$8 sm:%s21_s9]   ;;  %s83_s13 = smov 80  }
   0x2   :  { %9 = vrot.lane.b32.xlu0 %v67_v0, %s82_s10  ;;  %23 = vrot.lane.b32.xlu1 %v69_v1, %s83_s13  ;;  %s14_s14 = smov 3  ;;  %s28_s15 = smov 3  ;;  %vm32_vm4 = vcmask 654848   ;;  %vm39_vm5 = vcmask 523648   ;;  %vm46_vm6 = vcmask 392448   ;;  %vm53_vm7 = vcmask 261248  }
   0x3   :  { %s35_s16 = smov 3  ;;  %v68_v3 = vld [vmem:[%s129_s0 + $0x6] ss:$8 sm:%s14_s14]   ;;  %s84_s21 = smov 48   ;;  %v70_v4 = vld [vmem:[%s129_s0 + $0x4] ss:$8 sm:%s28_s15]  }
   0x4   :  { %v71_v2 = vld [vmem:[%s129_s0 + $0x3] ss:$8 sm:%s35_s16]   ;;  %s42_s24 = smov 3  ;;  %s85_s25 = smov 96  }
   0x5   :  { %37 = vrot.lane.b32.xlu2 %v71_v2, %s84_s21  ;;  %s86_s26 = smov 64   ;;  %s49_s27 = smov 3  ;;  %v72_v5 = vld [vmem:[%s129_s0 + $0x2] ss:$8 sm:%s42_s24]  }
   0x6   :  { %v73_v6 = vld [vmem:[%s129_s0 + $0x1] ss:$8 sm:%s49_s27]   ;;  %s87_s3 = smov 32   ;;  %s88_s4 = smov 16  }
   0x7   :  { %s2_s5 = smov 3 }
   0x8   :  { %v3_v7 = vld [vmem:[%s129_s0] ss:$8 sm:%s2_s5]  }
   0x9   :  { %5 = vst.msk [vmem:[#allocation0] ss:$8 sm:$0x3] %vm4_vm0, %v3_v7  }
   0xa   :  { %16 = vrot.lane.b32.xlu0 %v68_v3, %s85_s25  ;;  %30 = vrot.lane.b32.xlu1 %v70_v4, %s86_s26 }
   0xd   :  { %44 = vrot.lane.b32.xlu2 %v72_v5, %s87_s3 }
  0x12   :  { %51 = vrot.lane.b32.xlu0 %v73_v6, %s88_s4 }
  0x5f   :  { %v38_v8 = vpop.permute.xlu2 %37  }
  0x67   :  { %v45_v9 = vpop.permute.xlu2 %44  }
  0x74   :  { %v10_v10 = vpop.permute.xlu0 %9   ;;  %v24_v11 = vpop.permute.xlu1 %23  }
  0x75   :  { %12 = vst.msk [vmem:[#allocation0] ss:$8 sm:$0x3] %vm11_vm1, %v10_v10  }
  0x7c   :  { %v17_v12 = vpop.permute.xlu0 %16   ;;  %v31_v13 = vpop.permute.xlu1 %30  }
  0x7d   :  { %19 = vst.msk [vmem:[#allocation0] ss:$8 sm:$0x3] %vm18_vm2, %v17_v12  }
  0x7e   :  { %26 = vst.msk [vmem:[#allocation0] ss:$8 sm:$0x3] %vm25_vm3, %v24_v11  }
  0x7f   :  { %33 = vst.msk [vmem:[#allocation0] ss:$8 sm:$0x3] %vm32_vm4, %v31_v13  }
  0x80   :  { %40 = vst.msk [vmem:[#allocation0] ss:$8 sm:$0x3] %vm39_vm5, %v38_v8  }
  0x81   :  { %47 = vst.msk [vmem:[#allocation0] ss:$8 sm:$0x3] %vm46_vm6, %v45_v9  }
  0x84   :  { %v52_v14 = vpop.permute.xlu0 %51  }
  0x85   :  { %54 = vst.msk [vmem:[#allocation0] ss:$8 sm:$0x3] %vm53_vm7, %v52_v14  }
  0x8c   :  { %v57_v15 = vld [vmem:[#allocation0] sm:$0x1]  ;;  %v62_v16 = vld [vmem:[#allocation0 + $0x8] sm:$0x1] }
  0x8d   :  { %60 = vst [vmem:[%s130_s1] sm:$0x1] %v57_v15 }
  0x8e   :  { %74 = vst [vmem:[%s130_s1 + $0x1] sm:$0x1] %v62_v16 }

// kernel: generator_forward.1
= control target key start
LH: loop header
LB: loop body
LE: loop exit
PB: predicated region body
PF: predicated region fallthrough
CT: control target
= control target key end

     0   :  { %s1791_s30 = smov 0   ;;  %s1793_s10 = smov 0   ;;  %s2253_s0 = inlined_call_operand.vmem [shape: f32[8,16], index: 0, kind: input, shape index: {}]   ;;  %s2254_s1 = inlined_call_operand.vmem [shape: bf16[16,2048], index: 1, kind: input, shape index: {}]   ;;  %s2255_s2 = inlined_call_operand.vmem [shape: f32[1,2048], index: 2, kind: input, shape index: {}]   ;;  %s2256_s3 = inlined_call_operand.vmem [shape: bf16[128,128], index: 3, kind: input, shape index: {}]   ;;  %s2257_s4 = inlined_call_operand.vmem [shape: f32[1,128], index: 4, kind: input, shape index: {}]   ;;  %s2258_s5 = inlined_call_operand.vmem [shape: bf16[128,256], index: 5, kind: input, shape index: {}]   ;;  %s2259_s6 = inlined_call_operand.vmem [shape: f32[1,256], index: 6, kind: input, shape index: {}]   ;;  %s2260_s7 = inlined_call_operand.vmem [shape: bf16[256,256], index: 7, kind: input, shape index: {}]   ;;  %s2261_s8 = inlined_call_operand.vmem [shape: f32[1,256], index: 8, kind: input, shape index: {}]   ;;  %s2262_s9 = inlined_call_operand.vmem [shape: bf16[128,256], index: 9, kind: output, shape index: {}]  }
   0x1   :  { %s1795_s11 = smov 0  }
   0x2 LB: > { %s1307_s12 = sadd.s32 4294967295, %s1739_s11   ;;  %s1808_s13 = sadd.s32 1, %s1739_s11   ;;  %s1739_s11 = sphi %s1795_s11, %s2265_s11   ;;  %s1735_s10 = sphi %s1793_s10, %s2264_s10   ;;  %s1731_s30 = sphi %s1791_s30, %s2263_s30  }
   0x3   : > { %s44_s14 = ssub.s32 %s1739_s11, %s1808_s13  ;;  %s47_s15 = sadd.s32 1, %s1735_s10 }
   0x4   : > { %p45_p0 = scmp.eq.s32.totalorder %s44_s14, 0  ;;  %p54_p1 = scmp.ne.s32.totalorder %s1735_s10, %s1731_s30 }
   0x5   : > { %p55_p2 = scmp.eq.s32.totalorder %s1739_s11, 0  ;;  %p1310_p4 = scmp.ge.s32.totalorder %s1739_s11, 2 }
   0x6   : > { %s1817_s16 = scalar_select %p45_p0, %s1735_s10, %s47_s15  }
   0x7   : > { %p56_p3 = por %p55_p2, %p54_p1  ;;  %279 = sbr.rel (%p1310_p4) target bundleno = 24 (0x18), region = 44 }
   0xc   : > { %282 = sbr.rel (!%p56_p3) target bundleno = 24 (0x18), region = 48  ;;  %s284_s17 = sand.u32 (%p56_p3), 1, %s1735_s10  }
   0xd   : > { %s1586_s18 = sshll.u32 (%p56_p3), %s1739_s11, 5  ;;  %s1311_s19 = sshll.u32 (%p56_p3), %s284_s17, 6 }
   0xe   : > { %s289_s22 = scalar_lea.vmem (%p56_p3), %s2254_s1, %s1586_s18  ;;  %s286_s23 = scalar_lea.vmem (%p56_p3), [#allocation3], %s1311_s19 }
   0xf   : > { %v302_v0 = vld [vmem:[%s289_s22] sm:$0xff] (%p56_p3)  ;;  %v304_v1 = vld [vmem:[%s289_s22 + $0x8] sm:$0xff] (%p56_p3)  ;;  %v306_v2 = vld [vmem:[%s289_s22 + $0x10] sm:$0xff] (%p56_p3) }
  0x10   : > { %303 = vst [vmem:[%s286_s23] sm:$0xff] (%p56_p3), %v302_v0  ;;  %v308_v3 = vld [vmem:[%s289_s22 + $0x18] sm:$0xff] (%p56_p3)  ;;  %v310_v4 = vld [vmem:[%s289_s22 + $0x40] sm:$0xff] (%p56_p3)  ;;  %v312_v5 = vld [vmem:[%s289_s22 + $0x48] sm:$0xff] (%p56_p3) }
  0x11   : > { %305 = vst [vmem:[%s286_s23 + $0x8] sm:$0xff] %v304_v1  ;;  %v314_v6 = vld [vmem:[%s289_s22 + $0x50] sm:$0xff]  ;;  %v316_v7 = vld [vmem:[%s289_s22 + $0x58] sm:$0xff] }
  0x12   : > { %307 = vst [vmem:[%s286_s23 + $0x10] sm:$0xff] %v306_v2 }
  0x13   : > { %309 = vst [vmem:[%s286_s23 + $0x18] sm:$0xff] %v308_v3 }
  0x14   : > { %311 = vst [vmem:[%s286_s23 + $0x20] sm:$0xff] %v310_v4 }
  0x15   : > { %313 = vst [vmem:[%s286_s23 + $0x28] sm:$0xff] %v312_v5 }
  0x16   : > { %315 = vst [vmem:[%s286_s23 + $0x30] sm:$0xff] %v314_v6 }
  0x17   : > { %317 = vst [vmem:[%s286_s23 + $0x38] sm:$0xff] %v316_v7 }
  0x18 PF: > { %p1314_p5 = scmp.ge.s32.totalorder %s1739_s11, 1  ;;  %p330_p6 = scmp.lt.s32.totalorder %s1739_s11, 3 }
  0x1a   : > { %p331_p7 = pnand %p1314_p5, %p330_p6 }
  0x1b   : > { %s337_s24 = sand.u32 (!%p331_p7), 1, %s1731_s30   ;;  %s1316_s29 = sshll.u32 (!%p331_p7), %s1307_s12, 3 }
  0x1c   : > { %334 = sbr.rel (%p331_p7) target bundleno = 675 (0x2a3), region = 75  ;;  %s1315_s25 = sshll.u32 (!%p331_p7), %s337_s24, 6 }
  0x1d   : > { %s1831_s28 = scalar_lea.vmem (!%p331_p7), [#allocation3], %s1315_s25  ;;  %p379_p8 = scmp.lt.s32.totalorder (!%p331_p7), %s1316_s29, 15 }
  0x21   : > { %v391_v8 = vld [vmem:[%s2253_s0] sm:$0xff]  ;;  %vm459_vm0 = vcmask 130048   ;;  %v1330_v11 = vld [vmem:[%s1831_s28 + $0x8] sm:$0xf]  ;;  %v1589_v19 = vld [vmem:[%s1831_s28 + $0xc] sm:$0xf] }
  0x22   : > { %v1322_v9 = vld [vmem:[%s1831_s28] sm:$0xf]  ;;  %v1593_v13 = vld [vmem:[%s1831_s28 + $0x24] sm:$0xf0]  ;;  %v1588_v14 = vld [vmem:[%s1831_s28 + $0x4] sm:$0xf]  ;;  %v392_v17 = vpack.c.bf16 %v391_v8, %v391_v8 }
  0x23   : > { %v1592_v10 = vld [vmem:[%s1831_s28 + $0x1c] sm:$0xf0]  ;;  %v1324_v15 = vld [vmem:[%s1831_s28 + $0x20] sm:$0xf0]  ;;  %v1331_v16 = vor.u32 %v1593_v13, %v1330_v11  ;;  %v1332_v20 = vld [vmem:[%s1831_s28 + $0x28] sm:$0xf0] }
  0x24   : > { %v1323_v12 = vor.u32 %v1592_v10, %v1322_v9  ;;  %v1327_v18 = vor.u32 %v1588_v14, %v1324_v15  ;;  %v1338_v21 = vld [vmem:[%s1831_s28 + $0x10] sm:$0xf]  ;;  %v1335_v22 = vor.u32 %v1589_v19, %v1332_v20  ;;  %v1590_v24 = vld [vmem:[%s1831_s28 + $0x14] sm:$0xf]  ;;  %v1591_v28 = vld [vmem:[%s1831_s28 + $0x1c] sm:$0xf] }
  0x25   : > { %v1594_v23 = vld [vmem:[%s1831_s28 + $0x2c] sm:$0xf0]  ;;  %v1340_v25 = vld [vmem:[%s1831_s28 + $0x30] sm:$0xf0]  ;;  %496 = vmatpush.bf16.msra.mxu3 %v1331_v16  ;;  %v1348_v29 = vld [vmem:[%s1831_s28 + $0x38] sm:$0xf0] }
  0x26   : > { %470 = vmatpush.bf16.msra.mxu0 %v1323_v12  ;;  %v1339_v26 = vor.u32 %v1594_v23, %v1338_v21  ;;  %v1343_v27 = vor.u32 %v1590_v24, %v1340_v25  ;;  %v1346_v30 = vld [vmem:[%s1831_s28 + $0x18] sm:$0xf]  ;;  %v1351_v31 = vor.u32 %v1591_v28, %v1348_v29  ;;  %v1602_v35 = vld [vmem:[%s2256_s3 + $0x30] sm:$0xff]  ;;  %v1601_v36 = vld [vmem:[%s2256_s3 + $0x28] sm:$0xff]  ;;  %s2267_s29 = smov (!%p379_p8, %s1316_s29), 15 }
  0x27   : > { %v1595_v32 = vld [vmem:[%s1831_s28 + $0x34] sm:$0xf0]  ;;  %v1600_v37 = vld [vmem:[%s2256_s3 + $0x20] sm:$0xff]  ;;  %v1598_v39 = vld [vmem:[%s2256_s3 + $0x10] sm:$0xff]  ;;  %s381_s15 = scalar_lea.vmem %s2255_s2, %s2267_s29  ;;  %s1587_s26 = sshll.u32 %s2267_s29, 3 }
  0x28   : > { %535 = vmatpush.bf16.msra.mxu1 %v1343_v27  ;;  %1354 = vmatmul.msk.bf16.vlgmr.msra.gmra.mxu3 %vm459_vm0, %v392_v17  ;;  %v1347_v33 = vor.u32 %v1595_v32, %v1346_v30  ;;  %v1603_v34 = vld [vmem:[%s2256_s3 + $0x38] sm:$0xff]  ;;  %v1597_v40 = vld [vmem:[%s2256_s3 + $0x8] sm:$0xff]  ;;  %v1596_v41 = vld [vmem:[%s2256_s3] sm:$0xff]  ;;  %s2221_s30 = scalar_lea.vmem %s2262_s9, %s1587_s26 }
  0x29   : > { %509 = vmatpush.bf16.msrb.mxu3 %v1335_v22  ;;  %1352 = vmatmul.msk.bf16.vlgmr.msra.gmra.mxu0 %vm459_vm0, %v392_v17  ;;  %v1599_v38 = vld [vmem:[%s2256_s3 + $0x18] sm:$0xff]  ;;  %v1889_v45 = vld [vmem:[%s381_s15] sm:$0xff]  ;;  %v1450_v60 = vld [vmem:[%s2258_s5 + $0x70] sm:$0xf] }
  0x2a   : > { %483 = vmatpush.bf16.msrb.mxu0 %v1327_v18  ;;  %548 = vmatpush.bf16.msra.mxu2 %v1347_v33  ;;  %v403_v47 = vperm.slane %v1889_v45, 0  ;;  %v404_v49 = vperm.slane %v1889_v45, 1  ;;  %v1619_v61 = vld [vmem:[%s2258_s5 + $0x74] sm:$0xf0]  ;;  %v1618_v62 = vld [vmem:[%s2258_s5 + $0x74] sm:$0xf] }
  0x2b   : > { %1357 = vmatmul.msk.bf16.vlgmr.msra.gmra.mxu1 %vm459_vm0, %v392_v17  ;;  %v1451_v0 = vor.u32 %v1619_v61, %v1450_v60  ;;  %v1452_v1 = vld [vmem:[%s2258_s5 + $0x78] sm:$0xf0]  ;;  %v1442_v2 = vld [vmem:[%s2258_s5 + $0x60] sm:$0xf]  ;;  %v1617_v3 = vld [vmem:[%s2258_s5 + $0x64] sm:$0xf0] }
  0x2c   : > { %v406_v4 = vperm.slane %v1889_v45, 3  ;;  %v408_v5 = vperm.slane %v1889_v45, 5  ;;  %v1455_v6 = vor.u32 %v1618_v62, %v1452_v1  ;;  %v1616_v7 = vld [vmem:[%s2258_s5 + $0x64] sm:$0xf]  ;;  %v1444_v8 = vld [vmem:[%s2258_s5 + $0x68] sm:$0xf0]  ;;  %v1443_v9 = vor.u32 %v1617_v3, %v1442_v2 }
  0x2d   : > { %561 = vmatpush.bf16.msra.mxu3 %v1351_v31  ;;  %1358 = vmatmul.msk.bf16.vlgmr.msra.gmra.mxu2 %vm459_vm0, %v392_v17  ;;  %v405_v10 = vperm.slane %v1889_v45, 2  ;;  %v1447_v11 = vor.u32 %v1616_v7, %v1444_v8  ;;  %v1434_v12 = vld [vmem:[%s2258_s5 + $0x50] sm:$0xf]  ;;  %v1615_v13 = vld [vmem:[%s2258_s5 + $0x54] sm:$0xf0] }
  0x2e   : > { %522 = vmatpush.bf16.msra.mxu0 %v1339_v26  ;;  %806 = vmatpush.bf16.msrb.mxu1 %v1451_v0  ;;  %v1614_v14 = vld [vmem:[%s2258_s5 + $0x54] sm:$0xf]  ;;  %v1436_v15 = vld [vmem:[%s2258_s5 + $0x58] sm:$0xf0]  ;;  %v1435_v19 = vor.u32 %v1615_v13, %v1434_v12  ;;  %v1426_v23 = vld [vmem:[%s2258_s5 + $0x40] sm:$0xf] }
  0x2f   : > { %835 = vmatpush.bf16.msrb.mxu2 %v1455_v6  ;;  %v1439_v22 = vor.u32 %v1614_v14, %v1436_v15  ;;  %v1613_v24 = vld [vmem:[%s2258_s5 + $0x44] sm:$0xf0]  ;;  %v1612_v29 = vld [vmem:[%s2258_s5 + $0x44] sm:$0xf]  ;;  %v1428_v30 = vld [vmem:[%s2258_s5 + $0x48] sm:$0xf0] }
  0x30   : > { %v1427_v31 = vor.u32 %v1613_v24, %v1426_v23  ;;  %v1607_v60 = vld [vmem:[%s2258_s5 + $0x14] sm:$0xf0]  ;;  %v1606_v61 = vld [vmem:[%s2258_s5 + $0x14] sm:$0xf]  ;;  %v1394_v1 = vld [vmem:[%s2258_s5] sm:$0xf] }
  0x31   : > { %v1605_v2 = vld [vmem:[%s2258_s5 + $0x4] sm:$0xf0]  ;;  %v1604_v3 = vld [vmem:[%s2258_s5 + $0x4] sm:$0xf]  ;;  %v2001_v8 = vld [vmem:[%s2257_s4] ss:$0 sm:$0xff] }
  0x32   : > { %807 = vmatpush.bf16.msrb.mxu1 %v1443_v9  ;;  %v1650_v24 = vld [vmem:[%s2260_s7 + $0xf4] sm:$0xf] }
  0x33   : > { %836 = vmatpush.bf16.msrb.mxu2 %v1447_v11 }
  0x36   : > { %808 = vmatpush.bf16.msrb.mxu1 %v1435_v19 }
  0x37   : > { %837 = vmatpush.bf16.msrb.mxu2 %v1439_v22 }
  0x38   : > { %1355 = vmatmul.msk.bf16.vlgmr.msrb.gmra.mxu3 %vm459_vm0, %v392_v17 }
  0x39   : > { %1353 = vmatmul.msk.bf16.vlgmr.msrb.gmra.mxu0 %vm459_vm0, %v392_v17  ;;  %1652 = vmatpush.bf16.msrb.mxu3 %v1603_v34 }
  0x3a   : > { %663 = vmatpush.bf16.msrb.mxu0 %v1603_v34  ;;  %v1431_v34 = vor.u32 %v1612_v29, %v1428_v30  ;;  %809 = vmatpush.bf16.msrb.mxu1 %v1427_v31  ;;  %v1648_v29 = vld [vmem:[%s2260_s7 + $0xe4] sm:$0xf]  ;;  %v1572_v30 = vld [vmem:[%s2260_s7 + $0xe8] sm:$0xf0] }
  0x3c   : > { %838 = vmatpush.bf16.msrb.mxu2 %v1431_v34 }
  0x3d   : > { %1653 = vmatpush.bf16.msrb.mxu3 %v1602_v35 }
  0x3e   : > { %664 = vmatpush.bf16.msrb.mxu0 %v1602_v35 }
  0x41   : > { %1654 = vmatpush.bf16.msrb.mxu3 %v1601_v36 }
  0x42   : > { %665 = vmatpush.bf16.msrb.mxu0 %v1601_v36 }
  0x45   : > { %1655 = vmatpush.bf16.msrb.mxu3 %v1600_v37 }
  0x46   : > { %666 = vmatpush.bf16.msrb.mxu0 %v1600_v37  ;;  %v409_v37 = vperm.slane %v1889_v45, 6 }
  0x48   : > { %1359 = vmatmul.msk.bf16.vlgmr.msra.gmra.mxu3 %vm459_vm0, %v392_v17 }
  0x49   : > { %1356 = vmatmul.msk.bf16.vlgmr.msra.gmra.mxu0 %vm459_vm0, %v392_v17  ;;  %1656 = vmatpush.bf16.msrb.mxu3 %v1599_v38  ;;  %v407_v17 = vperm.slane %v1889_v45, 4 }
  0x4a   : > { %667 = vmatpush.bf16.msrb.mxu0 %v1599_v38  ;;  %v410_v38 = vperm.slane %v1889_v45, 7  ;;  %v1610_v45 = vld [vmem:[%s2258_s5 + $0x34] sm:$0xf] }
  0x4d   : > { %1657 = vmatpush.bf16.msrb.mxu3 %v1598_v39 }
  0x4e   : > { %668 = vmatpush.bf16.msrb.mxu0 %v1598_v39 }
  0x51   : > { %1658 = vmatpush.bf16.msrb.mxu3 %v1597_v40 }
  0x52   : > { %669 = vmatpush.bf16.msrb.mxu0 %v1597_v40 }
  0x55   : > { %1659 = vmatpush.bf16.msrb.mxu3 %v1596_v41 }
  0x56   : > { %670 = vmatpush.bf16.msrb.mxu0 %v1596_v41 }
  0xa6   : > { %v472_v42 = vpop.f32.mrf.mxu0 }
  0xa7   : > { %v473_v51 = vadd.f32 %v472_v42, %v403_v47 }
  0xa8   : > { %v537_v43 = vpop.f32.mrf.mxu1 }
  0xa9   : > { %v567_v55 = vmax.f32 %v473_v51, 0.0  ;;  %v538_v18 = vadd.f32 %v537_v43, %v408_v5  ;;  %v1396_v5 = vld [vmem:[%s2258_s5 + $0x8] sm:$0xf0] }
  0xaa   : > { %v1399_v6 = vor.u32 %v1604_v3, %v1396_v5  ;;  %v1548_v3 = vld [vmem:[%s2260_s7 + $0xb8] sm:$0xf0]  ;;  %v1647_v5 = vld [vmem:[%s2260_s7 + $0xd4] sm:$0xf0] }
  0xab   : > { %v498_v44 = vpop.f32.mrf.mxu3  ;;  %v572_v28 = vmax.f32 %v538_v18, 0.0 }
  0xac   : > { %v499_v20 = vadd.f32 %v498_v44, %v405_v10 }
  0xae   : > { %v474_v46 = vpop.f32.mrf.mxu0  ;;  %v569_v32 = vmax.f32 %v499_v20, 0.0 }
  0xb0   : > { %v539_v48 = vpop.f32.mrf.mxu1  ;;  %v1893_v50 = vpop.f32.mrf.mxu2 }
  0xb1   : > { %v551_v41 = vadd.f32 %v1893_v50, %v409_v37  ;;  %v1418_v48 = vld [vmem:[%s2258_s5 + $0x30] sm:$0xf]  ;;  %v1420_v50 = vld [vmem:[%s2258_s5 + $0x38] sm:$0xf0] }
  0xb3   : > { %v500_v52 = vpop.f32.mrf.mxu3  ;;  %v573_v43 = vmax.f32 %v551_v41, 0.0  ;;  %v1500_v41 = vld [vmem:[%s2260_s7 + $0x58] sm:$0xf0] }
  0xb4   : > { %v1423_v52 = vor.u32 %v1610_v45, %v1420_v50 }
  0xb6   : > { %v485_v53 = vpop.f32.mrf.mxu0  ;;  %839 = vmatpush.bf16.msrb.mxu2 %v1423_v52  ;;  %v1644_v52 = vld [vmem:[%s2260_s7 + $0xc4] sm:$0xf] }
  0xb7   : > { %v486_v54 = vadd.f32 %v485_v53, %v404_v49  ;;  %v1611_v49 = vld [vmem:[%s2258_s5 + $0x34] sm:$0xf0]  ;;  %v1410_v53 = vld [vmem:[%s2258_s5 + $0x20] sm:$0xf] }
  0xb8   : > { %v552_v58 = vpop.f32.mrf.mxu2  ;;  %v1419_v51 = vor.u32 %v1611_v49, %v1418_v48 }
  0xb9   : > { %v568_v56 = vmax.f32 %v486_v54, 0.0  ;;  %v1609_v54 = vld [vmem:[%s2258_s5 + $0x24] sm:$0xf0] }
  0xba   : > { %810 = vmatpush.bf16.msrb.mxu1 %v1419_v51  ;;  %v1578_v51 = vld [vmem:[%s2260_s7 + $0xf0] sm:$0xf] }
  0xbb   : > { %v591_v57 = vpack.c.bf16 %v568_v56, %v567_v55  ;;  %v511_v59 = vpop.f32.mrf.mxu3  ;;  %v1608_v55 = vld [vmem:[%s2258_s5 + $0x24] sm:$0xf]  ;;  %v1411_v56 = vor.u32 %v1609_v54, %v1410_v53  ;;  %v1556_v53 = vld [vmem:[%s2260_s7 + $0xc8] sm:$0xf0] }
  0xbc   : > { %v512_v16 = vadd.f32 %v511_v59, %v406_v4  ;;  %v1402_v59 = vld [vmem:[%s2258_s5 + $0x10] sm:$0xf]  ;;  %v1395_v4 = vor.u32 %v1605_v2, %v1394_v1  ;;  %v1642_v1 = vld [vmem:[%s2260_s7 + $0xb4] sm:$0xf] }
  0xbd   : > { %671 = vmatmul.bf16.vlgmr.msrb.gmra.mxu0 %v591_v57  ;;  %v1412_v57 = vld [vmem:[%s2258_s5 + $0x28] sm:$0xf0]  ;;  %v1403_v62 = vor.u32 %v1607_v60, %v1402_v59  ;;  %v1570_v60 = vld [vmem:[%s2260_s7 + $0xe0] sm:$0xf] }
  0xbe   : > { %v487_v63 = vpop.f32.mrf.mxu0  ;;  %v570_v26 = vmax.f32 %v512_v16, 0.0  ;;  %v1415_v58 = vor.u32 %v1608_v55, %v1412_v57  ;;  %811 = vmatpush.bf16.msrb.mxu1 %v1411_v56  ;;  %v1651_v55 = vld [vmem:[%s2260_s7 + $0xf4] sm:$0xf0]  ;;  %v1628_v57 = vld [vmem:[%s2260_s7 + $0x44] sm:$0xf] }
  0xbf   : > { %v1404_v63 = vld [vmem:[%s2258_s5 + $0x18] sm:$0xf0]  ;;  %v1579_v59 = vor.u32 %v1651_v55, %v1578_v51  ;;  %v1538_v51 = vld [vmem:[%s2260_s7 + $0xa0] sm:$0xf]  ;;  %v1620_v55 = vld [vmem:[%s2260_s7 + $0x4] sm:$0xf] }
  0xc0   : > { %v592_v36 = vpack.c.bf16 %v570_v26, %v569_v32  ;;  %840 = vmatpush.bf16.msrb.mxu2 %v1415_v58  ;;  %v1407_v0 = vor.u32 %v1606_v61, %v1404_v63  ;;  %v1634_v26 = vld [vmem:[%s2260_s7 + $0x74] sm:$0xf]  ;;  %v1632_v32 = vld [vmem:[%s2260_s7 + $0x64] sm:$0xf]  ;;  %v1492_v58 = vld [vmem:[%s2260_s7 + $0x48] sm:$0xf0] }
  0xc1   : > { %v1498_v61 = vld [vmem:[%s2260_s7 + $0x50] sm:$0xf]  ;;  %v1649_v63 = vld [vmem:[%s2260_s7 + $0xe4] sm:$0xf0]  ;;  %1115 = vmatpush.bf16.msra.mxu0 %v1579_v59 }
  0xc2   : > { %812 = vmatpush.bf16.msrb.mxu1 %v1403_v62  ;;  %v1631_v62 = vld [vmem:[%s2260_s7 + $0x54] sm:$0xf0]  ;;  %v1571_v2 = vor.u32 %v1649_v63, %v1570_v60  ;;  %v1530_v59 = vld [vmem:[%s2260_s7 + $0x90] sm:$0xf] }
  0xc3   : > { %v513_v21 = vpop.f32.mrf.mxu3  ;;  %v1639_v60 = vld [vmem:[%s2260_s7 + $0x94] sm:$0xf0] }
  0xc4   : > { %841 = vmatpush.bf16.msrb.mxu2 %v1407_v0  ;;  %v1559_v0 = vor.u32 %v1644_v52, %v1556_v53  ;;  %v1458_v53 = vld [vmem:[%s2260_s7] sm:$0xf]  ;;  %v1531_v63 = vor.u32 %v1639_v60, %v1530_v59 }
  0xc5   : > { %1116 = vmatpush.bf16.msra.mxu0 %v1571_v2  ;;  %v1637_v2 = vld [vmem:[%s2260_s7 + $0x84] sm:$0xf0] }
  0xc6   : > { %v524_v25 = vpop.f32.mrf.mxu0  ;;  %813 = vmatpush.bf16.msrb.mxu1 %v1395_v4  ;;  %v1562_v4 = vld [vmem:[%s2260_s7 + $0xd0] sm:$0xf] }
  0xc7   : > { %v525_v27 = vadd.f32 %v524_v25, %v407_v17  ;;  %v1580_v25 = vld [vmem:[%s2260_s7 + $0xf8] sm:$0xf0] }
  0xc8   : > { %842 = vmatpush.bf16.msrb.mxu2 %v1399_v6  ;;  %v1495_v6 = vor.u32 %v1628_v57, %v1492_v58  ;;  %v1460_v57 = vld [vmem:[%s2260_s7 + $0x8] sm:$0xf0] }
  0xc9   : > { %v571_v33 = vmax.f32 %v525_v27, 0.0  ;;  %v1583_v27 = vor.u32 %v1650_v24, %v1580_v25  ;;  %v1463_v58 = vor.u32 %v1620_v55, %v1460_v57 }
  0xcb   : > { %v593_v35 = vpack.c.bf16 %v572_v28, %v571_v33  ;;  %v563_v39 = vpop.f32.mrf.mxu3  ;;  %v1516_v28 = vld [vmem:[%s2260_s7 + $0x78] sm:$0xf0]  ;;  %v1508_v33 = vld [vmem:[%s2260_s7 + $0x68] sm:$0xf0] }
  0xcc   : > { %v564_v42 = vadd.f32 %v563_v39, %v410_v38  ;;  %v1519_v31 = vor.u32 %v1634_v26, %v1516_v28  ;;  %1173 = vmatpush.bf16.msra.mxu2 %v1583_v27  ;;  %v1511_v37 = vor.u32 %v1632_v32, %v1508_v33  ;;  %v1646_v38 = vld [vmem:[%s2260_s7 + $0xd4] sm:$0xf]  ;;  %v1564_v39 = vld [vmem:[%s2260_s7 + $0xd8] sm:$0xf0]  ;;  %v1482_v27 = vld [vmem:[%s2260_s7 + $0x30] sm:$0xf] }
  0xcd   : > { %676 = vmatmul.bf16.gmra.mxu0 %v592_v36  ;;  %681 = vmatmul.bf16.vlgmr.msrb.gmra.mxu3 %v593_v35  ;;  %v1575_v36 = vor.u32 %v1648_v29, %v1572_v30  ;;  %v1567_v45 = vor.u32 %v1646_v38, %v1564_v39  ;;  %v1627_v28 = vld [vmem:[%s2260_s7 + $0x34] sm:$0xf0]  ;;  %v1554_v30 = vld [vmem:[%s2260_s7 + $0xc0] sm:$0xf]  ;;  %v1624_v32 = vld [vmem:[%s2260_s7 + $0x24] sm:$0xf] }
  0xce   : > { %v526_v40 = vpop.f32.mrf.mxu0  ;;  %v574_v44 = vmax.f32 %v564_v42, 0.0  ;;  %1144 = vmatpush.bf16.msra.mxu1 %v1519_v31  ;;  %v1514_v42 = vld [vmem:[%s2260_s7 + $0x70] sm:$0xf]  ;;  %v1483_v29 = vor.u32 %v1627_v28, %v1482_v27  ;;  %v1476_v33 = vld [vmem:[%s2260_s7 + $0x28] sm:$0xf0] }
  0xcf   : > { %v1630_v40 = vld [vmem:[%s2260_s7 + $0x54] sm:$0xf]  ;;  %v1532_v38 = vld [vmem:[%s2260_s7 + $0x98] sm:$0xf0] }
  0xd0   : > { %v594_v47 = vpack.c.bf16 %v574_v44, %v573_v43  ;;  %v1635_v43 = vld [vmem:[%s2260_s7 + $0x74] sm:$0xf0]  ;;  %1174 = vmatpush.bf16.msra.mxu2 %v1575_v36  ;;  %v1503_v50 = vor.u32 %v1630_v40, %v1500_v41  ;;  %v1625_v36 = vld [vmem:[%s2260_s7 + $0x24] sm:$0xf0]  ;;  %v1546_v41 = vld [vmem:[%s2260_s7 + $0xb0] sm:$0xf] }
  0xd1   : > { %v1515_v44 = vor.u32 %v1635_v43, %v1514_v42  ;;  %v1643_v42 = vld [vmem:[%s2260_s7 + $0xb4] sm:$0xf0] }
  0xd2   : > { %1145 = vmatpush.bf16.msra.mxu1 %v1511_v37  ;;  %v1638_v37 = vld [vmem:[%s2260_s7 + $0x94] sm:$0xf]  ;;  %v1547_v43 = vor.u32 %v1643_v42, %v1546_v41 }
  0xd3   : > { %v565_v46 = vpop.f32.mrf.mxu3  ;;  %1086 = vmatpush.bf16.msra.mxu3 %v1515_v44  ;;  %v1535_v40 = vor.u32 %v1638_v37, %v1532_v38  ;;  %v1466_v44 = vld [vmem:[%s2260_s7 + $0x10] sm:$0xf] }
  0xd4   : > { %v1506_v46 = vld [vmem:[%s2260_s7 + $0x60] sm:$0xf]  ;;  %1175 = vmatpush.bf16.msra.mxu2 %v1567_v45 }
  0xd6   : > { %1146 = vmatpush.bf16.msra.mxu1 %v1503_v50  ;;  %v1641_v50 = vld [vmem:[%s2260_s7 + $0xa4] sm:$0xf0] }
  0xd7   : > { %v1539_v52 = vor.u32 %v1641_v50, %v1538_v51 }
  0xd8   : > { %1176 = vmatpush.bf16.msra.mxu2 %v1559_v0 }
  0xda   : > { %1147 = vmatpush.bf16.msra.mxu1 %v1495_v6 }
  0xdd   : > { %686 = vmatmul.bf16.gmra.mxu3 %v594_v47  ;;  %v1633_v47 = vld [vmem:[%s2260_s7 + $0x64] sm:$0xf0] }
  0xde   : > { %v1507_v54 = vor.u32 %v1633_v47, %v1506_v46  ;;  %v1623_v46 = vld [vmem:[%s2260_s7 + $0x14] sm:$0xf0]  ;;  %v1622_v47 = vld [vmem:[%s2260_s7 + $0x14] sm:$0xf] }
  0xe0   : > { %1087 = vmatpush.bf16.msra.mxu3 %v1507_v54  ;;  %v1621_v54 = vld [vmem:[%s2260_s7 + $0x4] sm:$0xf0] }
 0x13a   : > { %v672_v7 = vpop.f32.mrf.mxu0 }
 0x13b   : > { %v673_v9 = vadd.f32 %v2001_v8, %v672_v7  ;;  %v1499_v7 = vor.u32 %v1631_v62, %v1498_v61  ;;  %v1636_v61 = vld [vmem:[%s2260_s7 + $0x84] sm:$0xf]  ;;  %v1524_v62 = vld [vmem:[%s2260_s7 + $0x88] sm:$0xf0] }
 0x13c   : > { %v1527_v0 = vor.u32 %v1636_v61, %v1524_v62 }
 0x13d   : > { %v692_v12 = vmax.f32 %v673_v9, 0.0  ;;  %v1626_v9 = vld [vmem:[%s2260_s7 + $0x34] sm:$0xf]  ;;  %1088 = vmatpush.bf16.msra.mxu3 %v1499_v7 }
 0x142   : > { %v674_v10 = vpop.f32.mrf.mxu0 }
 0x143   : > { %v675_v11 = vadd.f32 %v2001_v8, %v674_v10 }
 0x145   : > { %v693_v13 = vmax.f32 %v675_v11, 0.0  ;;  %v1484_v11 = vld [vmem:[%s2260_s7 + $0x38] sm:$0xf0] }
 0x147   : > { %v700_v14 = vpack.c.bf16 %v693_v13, %v692_v12  ;;  %v1490_v12 = vld [vmem:[%s2260_s7 + $0x40] sm:$0xf]  ;;  %v1629_v13 = vld [vmem:[%s2260_s7 + $0x44] sm:$0xf0] }
 0x149   : > { %814 = vmatmul.bf16.vlgmr.msrb.gmra.mxu1 %v700_v14  ;;  %843 = vmatmul.bf16.vlgmr.msrb.gmra.mxu2 %v700_v14  ;;  %v1551_v14 = vor.u32 %v1642_v1, %v1548_v3  ;;  %v1522_v1 = vld [vmem:[%s2260_s7 + $0x80] sm:$0xf] }
 0x14a   : > { %v677_v15 = vpop.f32.mrf.mxu0  ;;  %v1523_v3 = vor.u32 %v1637_v2, %v1522_v1 }
 0x14b   : > { %v678_v17 = vadd.f32 %v2001_v8, %v677_v15  ;;  %v1563_v15 = vor.u32 %v1647_v5, %v1562_v4  ;;  %1177 = vmatpush.bf16.msra.mxu2 %v1551_v14  ;;  %v720_v4 = vld [vmem:[%s2259_s6] sm:$0x3] }
 0x14c   : > { %v722_v6 = vperm.slane %v720_v4, 0 }
 0x14d   : > { %v694_v20 = vmax.f32 %v678_v17, 0.0  ;;  %v1540_v17 = vld [vmem:[%s2260_s7 + $0xa8] sm:$0xf0]  ;;  %1117 = vmatpush.bf16.msra.mxu0 %v1563_v15 }
 0x150   : > { %v682_v16 = vpop.f32.mrf.mxu3 }
 0x151   : > { %v683_v34 = vadd.f32 %v2001_v8, %v682_v16  ;;  %v1640_v16 = vld [vmem:[%s2260_s7 + $0xa4] sm:$0xf] }
 0x152   : > { %v679_v18 = vpop.f32.mrf.mxu0 }
 0x153   : > { %v680_v19 = vadd.f32 %v2001_v8, %v679_v18  ;;  %v696_v48 = vmax.f32 %v683_v34, 0.0  ;;  %v1487_v18 = vor.u32 %v1626_v9, %v1484_v11  ;;  %v1474_v34 = vld [vmem:[%s2260_s7 + $0x20] sm:$0xf]  ;;  %v723_v11 = vperm.slane %v720_v4, 1 }
 0x154   : > { %v1475_v39 = vor.u32 %v1625_v36, %v1474_v34 }
 0x155   : > { %v695_v21 = vmax.f32 %v680_v19, 0.0  ;;  %v1491_v19 = vor.u32 %v1629_v13, %v1490_v12  ;;  %1148 = vmatpush.bf16.msra.mxu1 %v1487_v18 }
 0x157   : > { %v701_v22 = vpack.c.bf16 %v695_v21, %v694_v20  ;;  %v1543_v21 = vor.u32 %v1640_v16, %v1540_v17  ;;  %1089 = vmatpush.bf16.msra.mxu3 %v1491_v19 }
 0x158   : > { %v684_v23 = vpop.f32.mrf.mxu3 }
 0x159   : > { %819 = vmatmul.bf16.gmra.mxu1 %v701_v22  ;;  %848 = vmatmul.bf16.gmra.mxu2 %v701_v22  ;;  %v685_v35 = vadd.f32 %v2001_v8, %v684_v23 }
 0x15a   : > { %1178 = vmatpush.bf16.msra.mxu2 %v1543_v21 }
 0x15b   : > { %v697_v49 = vmax.f32 %v685_v35, 0.0  ;;  %1090 = vmatpush.bf16.msra.mxu3 %v1483_v29  ;;  %v1479_v35 = vor.u32 %v1624_v32, %v1476_v33 }
 0x15d   : > { %v702_v10 = vpack.c.bf16 %v697_v49, %v696_v48  ;;  %1149 = vmatpush.bf16.msra.mxu1 %v1479_v35  ;;  %v1467_v48 = vor.u32 %v1623_v46, %v1466_v44  ;;  %v1468_v49 = vld [vmem:[%s2260_s7 + $0x18] sm:$0xf0] }
 0x15e   : > { %1179 = vmatpush.bf16.msra.mxu2 %v1535_v40  ;;  %v1471_v45 = vor.u32 %v1622_v47, %v1468_v49 }
 0x15f   : > { %1091 = vmatpush.bf16.msra.mxu3 %v1475_v39 }
 0x160   : > { %v687_v56 = vpop.f32.mrf.mxu3 }
 0x161   : > { %v688_v22 = vadd.f32 %v2001_v8, %v687_v56  ;;  %1150 = vmatpush.bf16.msra.mxu1 %v1471_v45  ;;  %v1459_v56 = vor.u32 %v1621_v54, %v1458_v53 }
 0x162   : > { %1180 = vmatpush.bf16.msra.mxu2 %v1527_v0  ;;  %v920_v0 = vld [vmem:[%s2261_s8] sm:$0x3] }
 0x163   : > { %v698_v24 = vmax.f32 %v688_v22, 0.0  ;;  %1092 = vmatpush.bf16.msra.mxu3 %v1467_v48  ;;  %v2209_v1 = vperm.slane %v920_v0, 0  ;;  %v2211_v4 = vperm.slane %v920_v0, 1 }
 0x165   : > { %1151 = vmatpush.bf16.msra.mxu1 %v1463_v58 }
 0x167   : > { %1093 = vmatpush.bf16.msra.mxu3 %v1459_v56 }
 0x168   : > { %v689_v20 = vpop.f32.mrf.mxu3 }
 0x169   : > { %824 = vmatmul.bf16.gmra.mxu1 %v702_v10  ;;  %853 = vmatmul.bf16.gmra.mxu2 %v702_v10  ;;  %v690_v23 = vadd.f32 %v2001_v8, %v689_v20  ;;  %v1645_v8 = vld [vmem:[%s2260_s7 + $0xc4] sm:$0xf0] }
 0x16a   : > { %v1555_v31 = vor.u32 %v1645_v8, %v1554_v30 }
 0x16b   : > { %v699_v25 = vmax.f32 %v690_v23, 0.0 }
 0x16c   : > { %1118 = vmatpush.bf16.msra.mxu0 %v1555_v31 }
 0x16d   : > { %v703_v26 = vpack.c.bf16 %v699_v25, %v698_v24 }
 0x170   : > { %1119 = vmatpush.bf16.msra.mxu0 %v1547_v43 }
 0x174   : > { %1120 = vmatpush.bf16.msra.mxu0 %v1539_v52 }
 0x178   : > { %1121 = vmatpush.bf16.msra.mxu0 %v1531_v63 }
 0x179   : > { %829 = vmatmul.bf16.gmra.mxu1 %v703_v26  ;;  %858 = vmatmul.bf16.gmra.mxu2 %v703_v26 }
 0x17c   : > { %1122 = vmatpush.bf16.msra.mxu0 %v1523_v3 }
 0x1c6   : > { %v815_v5 = vpop.f32.mrf.mxu1 }
 0x1c7   : > { %v816_v9 = vadd.f32 %v815_v5, %v722_v6 }
 0x1c9   : > { %v864_v13 = vmax.f32 %v816_v9, 0.0 }
 0x1cc   : > { %v844_v7 = vpop.f32.mrf.mxu2 }
 0x1cd   : > { %v845_v15 = vadd.f32 %v844_v7, %v723_v11 }
 0x1ce   : > { %v817_v10 = vpop.f32.mrf.mxu1 }
 0x1cf   : > { %v818_v12 = vadd.f32 %v817_v10, %v722_v6  ;;  %v865_v20 = vmax.f32 %v845_v15, 0.0 }
 0x1d1   : > { %v866_v14 = vmax.f32 %v818_v12, 0.0 }
 0x1d3   : > { %v880_v16 = vpack.c.bf16 %v866_v14, %v864_v13 }
 0x1d4   : > { %v846_v17 = vpop.f32.mrf.mxu2 }
 0x1d5   : > { %v847_v18 = vadd.f32 %v846_v17, %v723_v11  ;;  %1094 = vmatmul.bf16.vlgmr.msra.gmra.mxu3 %v880_v16  ;;  %1152 = vmatmul.bf16.vlgmr.msra.gmra.mxu1 %v880_v16 }
 0x1d6   : > { %v820_v19 = vpop.f32.mrf.mxu1 }
 0x1d7   : > { %v867_v21 = vmax.f32 %v847_v18, 0.0  ;;  %v821_v24 = vadd.f32 %v820_v19, %v722_v6 }
 0x1d9   : > { %v881_v22 = vpack.c.bf16 %v867_v21, %v865_v20  ;;  %v868_v27 = vmax.f32 %v821_v24, 0.0 }
 0x1db   : > { %1123 = vmatmul.bf16.vlgmr.msra.gmra.mxu0 %v881_v22  ;;  %1181 = vmatmul.bf16.vlgmr.msra.gmra.mxu2 %v881_v22 }
 0x1dc   : > { %v849_v23 = vpop.f32.mrf.mxu2 }
 0x1dd   : > { %v850_v29 = vadd.f32 %v849_v23, %v723_v11 }
 0x1de   : > { %v822_v25 = vpop.f32.mrf.mxu1 }
 0x1df   : > { %v823_v26 = vadd.f32 %v822_v25, %v722_v6  ;;  %v869_v33 = vmax.f32 %v850_v29, 0.0 }
 0x1e1   : > { %v870_v28 = vmax.f32 %v823_v26, 0.0 }
 0x1e3   : > { %v882_v30 = vpack.c.bf16 %v870_v28, %v868_v27 }
 0x1e4   : > { %v851_v8 = vpop.f32.mrf.mxu2 }
 0x1e5   : > { %v852_v31 = vadd.f32 %v851_v8, %v723_v11  ;;  %1099 = vmatmul.bf16.gmra.mxu3 %v882_v30  ;;  %1157 = vmatmul.bf16.gmra.mxu1 %v882_v30 }
 0x1e6   : > { %v825_v32 = vpop.f32.mrf.mxu1 }
 0x1e7   : > { %v871_v34 = vmax.f32 %v852_v31, 0.0  ;;  %v826_v37 = vadd.f32 %v825_v32, %v722_v6 }
 0x1e9   : > { %v883_v35 = vpack.c.bf16 %v871_v34, %v869_v33  ;;  %v872_v40 = vmax.f32 %v826_v37, 0.0 }
 0x1eb   : > { %1128 = vmatmul.bf16.gmra.mxu0 %v883_v35  ;;  %1186 = vmatmul.bf16.gmra.mxu2 %v883_v35 }
 0x1ec   : > { %v854_v36 = vpop.f32.mrf.mxu2 }
 0x1ed   : > { %v855_v42 = vadd.f32 %v854_v36, %v723_v11 }
 0x1ee   : > { %v827_v38 = vpop.f32.mrf.mxu1 }
 0x1ef   : > { %v828_v39 = vadd.f32 %v827_v38, %v722_v6  ;;  %v873_v48 = vmax.f32 %v855_v42, 0.0 }
 0x1f1   : > { %v874_v41 = vmax.f32 %v828_v39, 0.0 }
 0x1f3   : > { %v884_v43 = vpack.c.bf16 %v874_v41, %v872_v40 }
 0x1f4   : > { %v856_v44 = vpop.f32.mrf.mxu2 }
 0x1f5   : > { %v857_v46 = vadd.f32 %v856_v44, %v723_v11  ;;  %1104 = vmatmul.bf16.gmra.mxu3 %v884_v43  ;;  %1162 = vmatmul.bf16.gmra.mxu1 %v884_v43 }
 0x1f6   : > { %v830_v47 = vpop.f32.mrf.mxu1 }
 0x1f7   : > { %v875_v49 = vmax.f32 %v857_v46, 0.0  ;;  %v831_v50 = vadd.f32 %v830_v47, %v722_v6 }
 0x1f9   : > { %v885_v45 = vpack.c.bf16 %v875_v49, %v873_v48  ;;  %v876_v54 = vmax.f32 %v831_v50, 0.0 }
 0x1fb   : > { %1133 = vmatmul.bf16.gmra.mxu0 %v885_v45  ;;  %1191 = vmatmul.bf16.gmra.mxu2 %v885_v45 }
 0x1fc   : > { %v859_v51 = vpop.f32.mrf.mxu2 }
 0x1fd   : > { %v860_v56 = vadd.f32 %v859_v51, %v723_v11 }
 0x1fe   : > { %v832_v52 = vpop.f32.mrf.mxu1 }
 0x1ff   : > { %v833_v53 = vadd.f32 %v832_v52, %v722_v6  ;;  %v877_v60 = vmax.f32 %v860_v56, 0.0 }
 0x201   : > { %v878_v55 = vmax.f32 %v833_v53, 0.0 }
 0x203   : > { %v886_v57 = vpack.c.bf16 %v878_v55, %v876_v54 }
 0x204   : > { %v861_v58 = vpop.f32.mrf.mxu2 }
 0x205   : > { %v862_v59 = vadd.f32 %v861_v58, %v723_v11  ;;  %1109 = vmatmul.bf16.gmra.mxu3 %v886_v57  ;;  %1167 = vmatmul.bf16.gmra.mxu1 %v886_v57 }
 0x207   : > { %v879_v61 = vmax.f32 %v862_v59, 0.0 }
 0x209   : > { %v887_v62 = vpack.c.bf16 %v879_v61, %v877_v60 }
 0x20b   : > { %1138 = vmatmul.bf16.gmra.mxu0 %v887_v62  ;;  %1196 = vmatmul.bf16.gmra.mxu2 %v887_v62 }
 0x252   : > { %v1153_v63 = vpop.f32.mrf.mxu1 }
 0x253   : > { %v1154_v9 = vadd.f32 %v1153_v63, %v2211_v4 }
 0x258   : > { %v1095_v2 = vpop.f32.mrf.mxu3  ;;  %v1124_v3 = vpop.f32.mrf.mxu0 }
 0x259   : > { %v1096_v5 = vadd.f32 %v1095_v2, %v2209_v1 }
 0x25a   : > { %v1155_v6 = vpop.f32.mrf.mxu1 }
 0x25b   : > { %v1125_v7 = vadd.f32 %v1124_v3, %v1096_v5  ;;  %v1156_v17 = vadd.f32 %v1155_v6, %v2211_v4 }
 0x25d   : > { %1685 = vtanh.f32 %v1125_v7 }
 0x25e   : > { %v1182_v10 = vpop.f32.mrf.mxu2 }
 0x25f   : > { %v1183_v11 = vadd.f32 %v1182_v10, %v1154_v9 }
 0x260   : > { %v1097_v12 = vpop.f32.mrf.mxu3  ;;  %v1126_v13 = vpop.f32.mrf.mxu0 }
 0x261   : > { %1687 = vtanh.f32 %v1183_v11  ;;  %v1098_v14 = vadd.f32 %v1097_v12, %v2209_v1 }
 0x262   : > { %v1158_v15 = vpop.f32.mrf.mxu1 }
 0x263   : > { %v1127_v16 = vadd.f32 %v1126_v13, %v1098_v14  ;;  %v1686_v18 = vpop.eup %1685  ;;  %v1159_v28 = vadd.f32 %v1158_v15, %v2211_v4 }
 0x265   : > { %1689 = vtanh.f32 %v1127_v16 }
 0x266   : > { %v1184_v19 = vpop.f32.mrf.mxu2 }
 0x267   : > { %v1688_v20 = vpop.eup %1687  ;;  %v1185_v21 = vadd.f32 %v1184_v19, %v1156_v17 }
 0x268   : > { %v1218_v22 = vpack.c.bf16 %v1688_v20, %v1686_v18  ;;  %v1100_v23 = vpop.f32.mrf.mxu3  ;;  %v1129_v24 = vpop.f32.mrf.mxu0 }
 0x269   : > { %1691 = vtanh.f32 %v1185_v21  ;;  %v1101_v25 = vadd.f32 %v1100_v23, %v2209_v1 }
 0x26a   : > { %1226 = vst [vmem:[%s2221_s30] sm:$0xff] %v1218_v22  ;;  %v1160_v26 = vpop.f32.mrf.mxu1 }
 0x26b   : > { %v1130_v27 = vadd.f32 %v1129_v24, %v1101_v25  ;;  %v1690_v29 = vpop.eup %1689  ;;  %v1161_v38 = vadd.f32 %v1160_v26, %v2211_v4 }
 0x26d   : > { %1693 = vtanh.f32 %v1130_v27 }
 0x26e   : > { %v1187_v30 = vpop.f32.mrf.mxu2 }
 0x26f   : > { %v1692_v8 = vpop.eup %1691  ;;  %v1188_v31 = vadd.f32 %v1187_v30, %v1159_v28 }
 0x270   : > { %v1219_v32 = vpack.c.bf16 %v1692_v8, %v1690_v29  ;;  %v1102_v33 = vpop.f32.mrf.mxu3  ;;  %v1131_v34 = vpop.f32.mrf.mxu0 }
 0x271   : > { %1695 = vtanh.f32 %v1188_v31  ;;  %v1103_v35 = vadd.f32 %v1102_v33, %v2209_v1 }
 0x272   : > { %1227 = vst [vmem:[%s2221_s30 + $0x8] sm:$0xff] %v1219_v32  ;;  %v1163_v37 = vpop.f32.mrf.mxu1 }
 0x273   : > { %v1132_v36 = vadd.f32 %v1131_v34, %v1103_v35  ;;  %v1694_v39 = vpop.eup %1693  ;;  %v1164_v49 = vadd.f32 %v1163_v37, %v2211_v4 }
 0x275   : > { %1697 = vtanh.f32 %v1132_v36 }
 0x276   : > { %v1189_v40 = vpop.f32.mrf.mxu2 }
 0x277   : > { %v1696_v41 = vpop.eup %1695  ;;  %v1190_v42 = vadd.f32 %v1189_v40, %v1161_v38 }
 0x278   : > { %v1220_v43 = vpack.c.bf16 %v1696_v41, %v1694_v39  ;;  %v1105_v44 = vpop.f32.mrf.mxu3  ;;  %v1134_v46 = vpop.f32.mrf.mxu0 }
 0x279   : > { %1699 = vtanh.f32 %v1190_v42  ;;  %v1106_v47 = vadd.f32 %v1105_v44, %v2209_v1 }
 0x27a   : > { %1228 = vst [vmem:[%s2221_s30 + $0x10] sm:$0xff] %v1220_v43  ;;  %v1165_v51 = vpop.f32.mrf.mxu1 }
 0x27b   : > { %v1135_v48 = vadd.f32 %v1134_v46, %v1106_v47  ;;  %v1698_v45 = vpop.eup %1697  ;;  %v1166_v59 = vadd.f32 %v1165_v51, %v2211_v4 }
 0x27d   : > { %1701 = vtanh.f32 %v1135_v48 }
 0x27e   : > { %v1192_v50 = vpop.f32.mrf.mxu2 }
 0x27f   : > { %v1700_v52 = vpop.eup %1699  ;;  %v1193_v53 = vadd.f32 %v1192_v50, %v1164_v49 }
 0x280   : > { %v1221_v54 = vpack.c.bf16 %v1700_v52, %v1698_v45  ;;  %v1107_v55 = vpop.f32.mrf.mxu3  ;;  %v1136_v56 = vpop.f32.mrf.mxu0 }
 0x281   : > { %1703 = vtanh.f32 %v1193_v53  ;;  %v1108_v57 = vadd.f32 %v1107_v55, %v2209_v1 }
 0x282   : > { %1229 = vst [vmem:[%s2221_s30 + $0x18] sm:$0xff] %v1221_v54  ;;  %v1168_v2 = vpop.f32.mrf.mxu1 }
 0x283   : > { %v1137_v58 = vadd.f32 %v1136_v56, %v1108_v57  ;;  %v1702_v60 = vpop.eup %1701  ;;  %v1169_v9 = vadd.f32 %v1168_v2, %v2211_v4 }
 0x285   : > { %1705 = vtanh.f32 %v1137_v58 }
 0x286   : > { %v1194_v61 = vpop.f32.mrf.mxu2 }
 0x287   : > { %v1704_v62 = vpop.eup %1703  ;;  %v1195_v63 = vadd.f32 %v1194_v61, %v1166_v59 }
 0x288   : > { %v1222_v0 = vpack.c.bf16 %v1704_v62, %v1702_v60  ;;  %v1110_v3 = vpop.f32.mrf.mxu3  ;;  %v1139_v6 = vpop.f32.mrf.mxu0 }
 0x289   : > { %1707 = vtanh.f32 %v1195_v63  ;;  %v1111_v5 = vadd.f32 %v1110_v3, %v2209_v1 }
 0x28a   : > { %1230 = vst [vmem:[%s2221_s30 + $0x20] sm:$0xff] %v1222_v0  ;;  %v1170_v17 = vpop.f32.mrf.mxu1 }
 0x28b   : > { %v1140_v7 = vadd.f32 %v1139_v6, %v1111_v5  ;;  %v1706_v10 = vpop.eup %1705  ;;  %v1171_v20 = vadd.f32 %v1170_v17, %v2211_v4 }
 0x28d   : > { %1709 = vtanh.f32 %v1140_v7 }
 0x28e   : > { %v1197_v11 = vpop.f32.mrf.mxu2 }
 0x28f   : > { %v1708_v12 = vpop.eup %1707  ;;  %v1198_v13 = vadd.f32 %v1197_v11, %v1169_v9 }
 0x290   : > { %v1223_v14 = vpack.c.bf16 %v1708_v12, %v1706_v10  ;;  %v1112_v15 = vpop.f32.mrf.mxu3  ;;  %v1141_v18 = vpop.f32.mrf.mxu0 }
 0x291   : > { %1711 = vtanh.f32 %v1198_v13  ;;  %v1113_v16 = vadd.f32 %v1112_v15, %v2209_v1 }
 0x292   : > { %1231 = vst [vmem:[%s2221_s30 + $0x28] sm:$0xff] %v1223_v14 }
 0x293   : > { %v1142_v19 = vadd.f32 %v1141_v18, %v1113_v16  ;;  %v1710_v21 = vpop.eup %1709 }
 0x295   : > { %1713 = vtanh.f32 %v1142_v19 }
 0x296   : > { %v1199_v22 = vpop.f32.mrf.mxu2 }
 0x297   : > { %v1712_v23 = vpop.eup %1711  ;;  %v1200_v24 = vadd.f32 %v1199_v22, %v1171_v20 }
 0x298   : > { %v1224_v25 = vpack.c.bf16 %v1712_v23, %v1710_v21 }
 0x299   : > { %1715 = vtanh.f32 %v1200_v24 }
 0x29a   : > { %1232 = vst [vmem:[%s2221_s30 + $0x30] sm:$0xff] %v1224_v25 }
 0x29b   : > { %v1714_v26 = vpop.eup %1713 }
 0x29f   : > { %v1716_v27 = vpop.eup %1715 }
 0x2a0   : > { %v1225_v28 = vpack.c.bf16 %v1716_v27, %v1714_v26 }
 0x2a2   : > { %1233 = vst [vmem:[%s2221_s30 + $0x38] sm:$0xff] %v1225_v28 }
 0x2a3 PF: > { %p16_p9 = scmp.ge.s32.totalorder %s1808_s13, 4   ;;  %s2263_s30 = smov %s1735_s10 }
 0x2a4   : > { %s2264_s10 = smov %s1817_s16  ;;  %s2265_s11 = smov %s1808_s13 }
 0x2a5   :  { %18 = sbr.rel (!%p16_p9) target bundleno = 2 (0x2), region = 117 }

</bundles_post_ra>
